<compile_context>
chip_gen: v6e
topology: v6e:2x2x1
jax: 0.10.0
libtpu: 0.0.40
codegen_flags: <defaults>
</compile_context>

<pallas_src>
from typing import Tuple

import numpy as np
import jax
import jax.numpy as jnp
from jax.experimental import pallas as pl
from jax.experimental.pallas import tpu as pltpu

KHAXDIM = 12
SIGMOID_SCL = 1.0
ANGLE_PI_MULTS = (0.1, 0.167, 0.25, 0.25)
# thrs_[-1] = (0.0, 1.0, (1.2,)*8) expanded to length 32:
THR_LAST = (0.0,) * KHAXDIM + (1.0,) * KHAXDIM + (1.2,) * 8
EPS = 1e-8
FEAT = 20          # 12 subdec features + 8 z features
FEAT_PAD = 32      # zero-padded feature count (sublane-friendly for f32/bf16)

Ax = Tuple[Tuple[int, ...], Tuple[int, ...]]


# --------------------------------------------------------------------------
# Structural helpers copied from the module
# --------------------------------------------------------------------------
def inv(ax: Ax) -> Ax:
    return (ax[1], ax[0])


def missing_types(ax: Ax) -> Tuple[int, ...]:
    neg, pos = ax
    used = neg + pos
    return tuple(i for i in range(1, 17) if i not in used)


def tpl(*ax):
    return ax


# --------------------------------------------------------------------------
# Deterministic synthetic stand-ins for the JATS constant tables
# --------------------------------------------------------------------------
def _dich(bit: int) -> Ax:
    neg = tuple(t for t in range(1, 17) if not ((t - 1) >> bit) & 1)
    pos = tuple(t for t in range(1, 17) if ((t - 1) >> bit) & 1)
    return (neg, pos)


def _xor_dich(b0: int, b1: int) -> Ax:
    neg = tuple(t for t in range(1, 17)
                if ((((t - 1) >> b0) & 1) ^ (((t - 1) >> b1) & 1)) == 0)
    pos = tuple(t for t in range(1, 17)
                if ((((t - 1) >> b0) & 1) ^ (((t - 1) >> b1) & 1)) == 1)
    return (neg, pos)


E = _dich(0)
N = _dich(1)
T = _dich(2)
R = _dich(3)
AB = _xor_dich(0, 1)
AD = _xor_dich(0, 2)

# 12 "KH" axes: each splits the 16 types in two halves, deterministically.
KHAX1 = tuple(tuple(t for t in range(1, 17) if ((t - 1 + k) % 16) < 8)
              for k in range(KHAXDIM))
KHAX0 = tuple(tuple(t for t in range(1, 17) if ((t - 1 + k) % 16) >= 8)
              for k in range(KHAXDIM))

# 12 "other" axes: 4 neg + 4 pos types -> missing_types yields the other 8.
_QUARTETS = tuple(tuple(range(4 * i + 1, 4 * i + 5)) for i in range(4))
_AXES12 = tuple((_QUARTETS[j % 4], _QUARTETS[(j + 1) % 4]) for j in range(KHAXDIM))
KHAX_OTHER = tuple(missing_types(ax) for ax in _AXES12)


def get_khaxes():
    return (KHAX0[:KHAXDIM] + KHAX_OTHER[:KHAXDIM],
            KHAX1[:KHAXDIM] + KHAX_OTHER[:KHAXDIM])


def get_axes():
    axes = tuple(tpl(N[i], AB[i], AD[i], T[i], inv(R)[i], E[i], AD[i], E[i])
                 for i in (0, 1))
    return (axes[0], axes[1])


def get_q_types():
    khaxes, axes = get_khaxes(), get_axes()
    return khaxes[1] + axes[1] + khaxes[0] + axes[0]


def get_q_subsets():
    q_subsets_ = [[] for _ in range(16)]
    for axis_i, axis_types in enumerate(get_q_types()):
        for type_ in axis_types:
            q_subsets_[type_ - 1].append(axis_i)
    return tuple(tuple(sorted(s)) for s in q_subsets_)


# --------------------------------------------------------------------------
# Parameter construction (deterministic, in-script)
# --------------------------------------------------------------------------
def get_inv_rot_2d(angle_pi_mult: float) -> np.ndarray:
    angle = angle_pi_mult * np.pi
    c, s = np.cos(angle), np.sin(angle)
    # torch: [[cos, -sin], [sin, cos]].transpose(0, 1) = [[cos, sin], [-sin, cos]]
    return np.array([[c, s], [-s, c]], dtype=np.float32)


def build_rot_matrix(inv_rots) -> np.ndarray:
    """8x8 W such that z @ W == rot_transform(z) (lastthr=True path)."""
    W = np.zeros((8, 8), dtype=np.float32)
    pairs = [((0, 7), 1), ((1, 2), 2), ((3, 4), 2), ((5, 6), 3)]
    for out_base, ((a, b), ridx) in enumerate(pairs):
        Rm = inv_rots[ridx]
        c0, c1 = 2 * out_base, 2 * out_base + 1
        W[a, c0], W[a, c1] = Rm[0, 0], Rm[0, 1]
        W[b, c0], W[b, c1] = Rm[1, 0], Rm[1, 1]
    return W


def build_fused_params(W: np.ndarray, thr32: np.ndarray, scl: float):
    """Transposed fused map G^T (64, 32) and threshold column (64, 1) s.t.
       a^T = G^T @ [subdec; z; 0]^T + thr_col  ==  cat([(z_+thr), (-z_+thr)], 1)^T * scl
       with z_ = cat([subdec, subdec, z@W], 1)."""
    gs = np.zeros((KHAXDIM, 64), dtype=np.float32)
    for i in range(KHAXDIM):
        gs[i, i] = 1.0                    # pos, subdec copy 1 (cols 0:12)
        gs[i, KHAXDIM + i] = 1.0          # pos, subdec copy 2 (cols 12:24)
        gs[i, 32 + i] = -1.0              # neg, subdec copy 1 (cols 32:44)
        gs[i, 32 + KHAXDIM + i] = -1.0    # neg, subdec copy 2 (cols 44:56)
    gz = np.zeros((8, 64), dtype=np.float32)
    gz[:, 2 * KHAXDIM:32] = W             # pos rot (cols 24:32)
    gz[:, 32 + 2 * KHAXDIM:64] = -W       # neg rot (cols 56:64)
    g = np.zeros((FEAT_PAD, 64), dtype=np.float32)
    g[:KHAXDIM] = gs
    g[KHAXDIM:FEAT] = gz
    g_t = (g * scl).T.astype(np.float32)                                   # (64, 32)
    thr_col = (np.concatenate([thr32, thr32]) * scl).reshape(64, 1)
    return g_t, thr_col.astype(np.float32)


def build_membership(q_subsets) -> np.ndarray:
    """(16, 64) 0/1 matrix: M[t, j] = 1 iff axis j is in type t's subset."""
    M = np.zeros((16, 64), dtype=np.float32)
    for t, subset in enumerate(q_subsets):
        for j in subset:
            M[t, j] = 1.0
    return M


# --------------------------------------------------------------------------
# Pallas kernel: one batch tile -> one scalar loss partial
# --------------------------------------------------------------------------
def _jats_reg_kernel(x_ref, y_ref, g_ref, thr_ref, m_ref, out_ref):
    """x_ref:   (32, TB)   bf16  feature-major [subdec(12); z(8); zero-pad(12)]
       y_ref:   (1, TB)    int32 class ids; padded lanes hold 16 (matches nothing)
       g_ref:   (64, 32)   bf16  fused linear map, transposed (resident)
       thr_ref: (64, 1)    f32   threshold bias column (resident)
       m_ref:   (64, 16)   bf16  membership matrix M^T (resident)
       out_ref: (1, 8, 128) f32  per-block loss partial (scalar broadcast)"""
    tb = x_ref.shape[1]

    # Pre-activations of BOTH sigmoid sides; batch on the MXU N axis (lanes).
    a = jnp.dot(g_ref[...], x_ref[...],
                preferred_element_type=jnp.float32)            # (64, TB) f32
    a = a + thr_ref[...]                                       # f32 bias add

    # Reference semantics including the epsilon: log(sigmoid(a) + 1e-8), all f32.
    q = 1.0 / (1.0 + jnp.exp(-a))
    log_q = jnp.log(q + EPS)                                   # (64, TB) f32

    # Per-sample membership rows: M^T @ onehot(y) — exact 0/1 bf16 operands.
    cls = jax.lax.broadcasted_iota(jnp.int32, (16, tb), 0)
    onehot = jnp.where(cls == y_ref[...], 1.0, 0.0).astype(jnp.bfloat16)   # (16, TB)
    m_rows = jnp.dot(m_ref[...], onehot,
                     preferred_element_type=jnp.float32)       # (64, TB) f32

    # Masked sum for this tile (padded lanes have an all-zero one-hot column).
    s = jnp.sum(m_rows * log_q, axis=1, keepdims=True)         # (64, 1)
    s = jnp.sum(s, axis=0, keepdims=True)                      # (1, 1)
    out_ref[...] = jnp.zeros((1, 8, 128), jnp.float32) + s.reshape(1, 1, 1)


def _round_up(x: int, m: int) -> int:
    return ((x + m - 1) // m) * m


def jats_regularizer_forward(z, subdec_z, y, g_t, thr_col, m_t, *, tb=8192):
    """z: (B, 8), subdec_z: (B, 12), y: (B,) int in [0, 16). Returns scalar f32."""
    B = z.shape[0]
    assert tb % 128 == 0, "batch tile must be lane-aligned"
    # >=2 grid blocks whenever possible so v7x's two TensorCores both get work.
    TB = min(int(tb), max(128, _round_up(-(-B // 2), 128)))
    nblk = -(-B // TB)
    Bp = nblk * TB

    # Feature-major, lane-dense, zero-padded input slab (bf16 matmul operand).
    feat = jnp.concatenate(
        [subdec_z.astype(jnp.float32), z.astype(jnp.float32)], axis=1).T   # (20, B)
    x_t = jnp.zeros((FEAT_PAD, Bp), jnp.float32).at[:FEAT, :B].set(feat)
    x_t = x_t.astype(jnp.bfloat16)
    # Padded lanes get class 16: the one-hot rows 0..15 never match -> 0 contribution.
    y_p = jnp.full((1, Bp), 16, jnp.int32).at[0, :B].set(y.astype(jnp.int32))

    partials = pl.pallas_call(
        _jats_reg_kernel,
        out_shape=jax.ShapeDtypeStruct((nblk, 8, 128), jnp.float32),
        grid=(nblk,),
        in_specs=[
            pl.BlockSpec((FEAT_PAD, TB), lambda i: (0, i)),   # x^T (lane-dense)
            pl.BlockSpec((1, TB), lambda i: (0, i)),          # y (lane-major)
            pl.BlockSpec((64, FEAT_PAD), lambda i: (0, 0)),   # G^T  (resident)
            pl.BlockSpec((64, 1), lambda i: (0, 0)),          # thr  (resident, f32)
            pl.BlockSpec((64, 16), lambda i: (0, 0)),         # M^T  (resident)
        ],
        out_specs=pl.BlockSpec((1, 8, 128), lambda i: (i, 0, 0)),
        compiler_params=pltpu.CompilerParams(
            dimension_semantics=("parallel",)),               # shard blocks over TCs
    )(x_t, y_p,
      g_t.astype(jnp.bfloat16), thr_col.astype(jnp.float32), m_t.astype(jnp.bfloat16))

    # Each block wrote its scalar partial broadcast into an (8,128) tile.
    return -jnp.sum(partials[:, 0, 0])


# --------------------------------------------------------------------------
# Pure NumPy reference mirroring the PyTorch forward exactly
# --------------------------------------------------------------------------
def reference_forward(z, subdec, y, inv_rots, thr, q_subsets):
    def sigm(v):
        return 1.0 / (1.0 + np.exp(-v))

    rot = np.concatenate([
        z[:, (0, 7)] @ inv_rots[1],
        z[:, (1, 2)] @ inv_rots[2],
        z[:, (3, 4)] @ inv_rots[2],
        z[:, (5, 6)] @ inv_rots[3],
    ], axis=1)
    z_ = np.concatenate([subdec, subdec, rot], axis=1)
    q = np.concatenate([sigm((z_ + thr) * SIGMOID_SCL),
                        sigm((-z_ + thr) * SIGMOID_SCL)], axis=1)
    total = 0.0
    for i in range(16):
        mask = (y == i)
        if mask.sum() > 0:
            total += np.log(q[mask][:, list(q_subsets[i])] + EPS).sum()
    return -total


if __name__ == "__main__":
    # deterministic parameters
    inv_rots = [get_inv_rot_2d(a) for a in ANGLE_PI_MULTS]
    W = build_rot_matrix(inv_rots)
    g_t_np, thr_col_np = build_fused_params(
        W, np.array(THR_LAST, dtype=np.float32), SIGMOID_SCL)
    q_subsets = get_q_subsets()
    assert len(q_subsets) == 16
    m_t_np = build_membership(q_subsets).T                     # (64, 16)

    g_t = jnp.asarray(g_t_np)
    thr_col = jnp.asarray(thr_col_np)
    m_t = jnp.asarray(m_t_np)

    loss_fn = jax.jit(jats_regularizer_forward, static_argnames=("tb",))
    inv_rots64 = [r.astype(np.float64) for r in inv_rots]
    thr_ref64 = np.array(THR_LAST, dtype=np.float64)

    # bf16 matmul operands (inputs + rotation weights) perturb the loss by
    # ~0.1% relative; tolerances are set accordingly.
    RTOL, ATOL = 5e-3, 1e-2

    # --- test 1: small batch, single block -------------------------------
    B = 16
    key = jax.random.PRNGKey(0)
    kz, ks, ky = jax.random.split(key, 3)
    z = jax.random.normal(kz, (B, 8), dtype=jnp.float32)
    subdec_z = jax.random.normal(ks, (B, 12), dtype=jnp.float32)
    y = jax.random.randint(ky, (B,), 0, 16, dtype=jnp.int32)

    loss = jax.block_until_ready(loss_fn(z, subdec_z, y, g_t, thr_col, m_t))
    ref = reference_forward(np.asarray(z, dtype=np.float64),
                            np.asarray(subdec_z, dtype=np.float64),
                            np.asarray(y), inv_rots64, thr_ref64, q_subsets)
    np.testing.assert_allclose(float(loss), float(ref), rtol=RTOL, atol=ATOL)

    # --- test 2: multi-block grid with zero-padded last tile -------------
    B2 = 300
    kz2, ks2, ky2 = jax.random.split(jax.random.PRNGKey(1), 3)
    z2 = jax.random.normal(kz2, (B2, 8), dtype=jnp.float32)
    s2 = jax.random.normal(ks2, (B2, 12), dtype=jnp.float32)
    y2 = jax.random.randint(ky2, (B2,), 0, 16, dtype=jnp.int32)

    loss2 = jax.block_until_ready(loss_fn(z2, s2, y2, g_t, thr_col, m_t, tb=128))
    ref2 = reference_forward(np.asarray(z2, dtype=np.float64),
                             np.asarray(s2, dtype=np.float64),
                             np.asarray(y2), inv_rots64, thr_ref64, q_subsets)
    np.testing.assert_allclose(float(loss2), float(ref2), rtol=RTOL, atol=ATOL)

    print("KERNEL_OK")
</pallas_src>

<mosaic_0001>
module attributes {stable_mosaic.version = 11 : i64} {
  func.func @_jats_reg_kernel(%arg0: i32, %arg1: memref<32x128xbf16, #tpu.memory_space<vmem>>, %arg2: memref<1x128xi32, #tpu.memory_space<vmem>>, %arg3: memref<64x32xbf16, #tpu.memory_space<vmem>>, %arg4: memref<64x1xf32, #tpu.memory_space<vmem>>, %arg5: memref<64x16xbf16, #tpu.memory_space<vmem>>, %arg6: memref<1x8x128xf32, #tpu.memory_space<vmem>>) attributes {dimension_semantics = [#tpu.dimension_semantics<parallel>], iteration_bounds = array<i64: 1>, scalar_prefetch = 0 : i64, scratch_operands = 0 : i64, tpu.core_type = #tpu.core_type<tc>, window_params = [{transform_indices = @transform_0, window_bounds = array<i64: 32, 128>}, {transform_indices = @transform_1, window_bounds = array<i64: 1, 128>}, {pipeline_mode = #tpu.pipeline_mode<synchronous>, transform_indices = @transform_2, window_bounds = array<i64: 64, 32>}, {pipeline_mode = #tpu.pipeline_mode<synchronous>, transform_indices = @transform_3, window_bounds = array<i64: 64, 1>}, {pipeline_mode = #tpu.pipeline_mode<synchronous>, transform_indices = @transform_4, window_bounds = array<i64: 64, 16>}, {transform_indices = @transform_5, window_bounds = array<i64: 1, 8, 128>}]} {
    %c0 = arith.constant 0 : index
    %c0_0 = arith.constant 0 : index
    %0 = vector.load %arg3[%c0, %c0_0] : memref<64x32xbf16, #tpu.memory_space<vmem>>, vector<64x32xbf16>
    %c0_1 = arith.constant 0 : index
    %c0_2 = arith.constant 0 : index
    %1 = vector.load %arg1[%c0_1, %c0_2] : memref<32x128xbf16, #tpu.memory_space<vmem>>, vector<32x128xbf16>
    %cst = arith.constant dense<0.000000e+00> : vector<64x128xf32>
    %2 = tpu.matmul %0, %1, %cst {dimension_numbers = #tpu.dot_dimension_numbers<[1], [0], [0], [1], [0, 0, 1, 1], [], []>} : vector<64x32xbf16>, vector<32x128xbf16>, vector<64x128xf32> -> vector<64x128xf32>
    %c0_3 = arith.constant 0 : index
    %c0_4 = arith.constant 0 : index
    %3 = vector.load %arg4[%c0_3, %c0_4] : memref<64x1xf32, #tpu.memory_space<vmem>>, vector<64x1xf32>
    %4 = vector.broadcast %3 : vector<64x1xf32> to vector<64x128xf32>
    %5 = arith.addf %2, %4 : vector<64x128xf32>
    %cst_5 = arith.constant 0.000000e+00 : f32
    %6 = vector.broadcast %cst_5 : f32 to vector<64x128xf32>
    %7 = arith.subf %6, %5 : vector<64x128xf32>
    %8 = math.exp %7 : vector<64x128xf32>
    %cst_6 = arith.constant 1.000000e+00 : f32
    %9 = vector.broadcast %cst_6 : f32 to vector<64x128xf32>
    %10 = arith.addf %9, %8 : vector<64x128xf32>
    %cst_7 = arith.constant 1.000000e+00 : f32
    %11 = vector.broadcast %cst_7 : f32 to vector<64x128xf32>
    %12 = arith.divf %11, %10 : vector<64x128xf32>
    %cst_8 = arith.constant 9.99999993E-9 : f32
    %13 = vector.broadcast %cst_8 : f32 to vector<64x128xf32>
    %14 = arith.addf %12, %13 : vector<64x128xf32>
    %15 = math.log %14 : vector<64x128xf32>
    %16 = tpu.iota {dimensions = array<i32: 0>} : vector<16x128xi32>
    %c0_9 = arith.constant 0 : index
    %c0_10 = arith.constant 0 : index
    %17 = vector.load %arg2[%c0_9, %c0_10] : memref<1x128xi32, #tpu.memory_space<vmem>>, vector<1x128xi32>
    %18 = vector.broadcast %17 : vector<1x128xi32> to vector<16x128xi32>
    %19 = arith.cmpi eq, %16, %18 : vector<16x128xi32>
    %cst_11 = arith.constant 1.000000e+00 : f32
    %cst_12 = arith.constant 0.000000e+00 : f32
    %20 = vector.broadcast %cst_11 : f32 to vector<16x128xf32>
    %21 = vector.broadcast %cst_12 : f32 to vector<16x128xf32>
    %22 = arith.select %19, %20, %21 : vector<16x128xi1>, vector<16x128xf32>
    %23 = arith.truncf %22 : vector<16x128xf32> to vector<16x128xbf16>
    %c0_13 = arith.constant 0 : index
    %c0_14 = arith.constant 0 : index
    %24 = vector.load %arg5[%c0_13, %c0_14] : memref<64x16xbf16, #tpu.memory_space<vmem>>, vector<64x16xbf16>
    %cst_15 = arith.constant dense<0.000000e+00> : vector<64x128xf32>
    %25 = tpu.matmul %24, %23, %cst_15 {dimension_numbers = #tpu.dot_dimension_numbers<[1], [0], [0], [1], [0, 0, 1, 1], [], []>} : vector<64x16xbf16>, vector<16x128xbf16>, vector<64x128xf32> -> vector<64x128xf32>
    %26 = arith.mulf %25, %15 : vector<64x128xf32>
    %cst_16 = arith.constant dense<0.000000e+00> : vector<64xf32>
    %27 = vector.multi_reduction <add>, %26, %cst_16 [1] : vector<64x128xf32> to vector<64xf32>
    %28 = vector.shape_cast %27 : vector<64xf32> to vector<64x1xf32>
    %cst_17 = arith.constant dense<0.000000e+00> : vector<1xf32>
    %29 = vector.multi_reduction <add>, %28, %cst_17 [0] : vector<64x1xf32> to vector<1xf32>
    %30 = vector.shape_cast %29 : vector<1xf32> to vector<1x1xf32>
    %cst_18 = arith.constant 0.000000e+00 : f32
    %31 = vector.broadcast %cst_18 : f32 to vector<1x8x128xf32>
    %32 = vector.shape_cast %30 : vector<1x1xf32> to vector<1x1x1xf32>
    %33 = vector.broadcast %32 : vector<1x1x1xf32> to vector<1x8x128xf32>
    %34 = arith.addf %31, %33 : vector<1x8x128xf32>
    %c0_19 = arith.constant 0 : index
    %c0_20 = arith.constant 0 : index
    %c0_21 = arith.constant 0 : index
    %35 = vector.load %arg6[%c0_19, %c0_20, %c0_21] : memref<1x8x128xf32, #tpu.memory_space<vmem>>, vector<1x8x128xf32>
    tpu.vector_store %arg6[%c0_19, %c0_20, %c0_21], %34 {strides = array<i32>} : memref<1x8x128xf32, #tpu.memory_space<vmem>>, vector<1x8x128xf32>,
    return
  }
  func.func @transform_0(%arg0: i32) -> (i32, i32) {
    %c0_i32 = arith.constant 0 : i32
    %c0_i32_0 = arith.constant 0 : i32
    return %c0_i32, %arg0 : i32, i32
  }
  func.func @transform_1(%arg0: i32) -> (i32, i32) {
    %c0_i32 = arith.constant 0 : i32
    %c0_i32_0 = arith.constant 0 : i32
    return %c0_i32, %arg0 : i32, i32
  }
  func.func @transform_2(%arg0: i32) -> (i32, i32) {
    %c0_i32 = arith.constant 0 : i32
    %c0_i32_0 = arith.constant 0 : i32
    %c0_i32_1 = arith.constant 0 : i32
    return %c0_i32, %c0_i32_0 : i32, i32
  }
  func.func @transform_3(%arg0: i32) -> (i32, i32) {
    %c0_i32 = arith.constant 0 : i32
    %c0_i32_0 = arith.constant 0 : i32
    %c0_i32_1 = arith.constant 0 : i32
    return %c0_i32, %c0_i32_0 : i32, i32
  }
  func.func @transform_4(%arg0: i32) -> (i32, i32) {
    %c0_i32 = arith.constant 0 : i32
    %c0_i32_0 = arith.constant 0 : i32
    %c0_i32_1 = arith.constant 0 : i32
    return %c0_i32, %c0_i32_0 : i32, i32
  }
  func.func @transform_5(%arg0: i32) -> (i32, i32, i32) {
    %c0_i32 = arith.constant 0 : i32
    %c0_i32_0 = arith.constant 0 : i32
    %c0_i32_1 = arith.constant 0 : i32
    return %arg0, %c0_i32, %c0_i32_0 : i32, i32, i32
  }
}

</mosaic_0001>

<bundles_post_ra>
// kernel: jats_regularizer_forward.1
= control target key start
LH: loop header
LB: loop body
LE: loop exit
PB: predicated region body
PF: predicated region fallthrough
CT: control target
= control target key end

     0   :  { %vm113_vm0 = vcmask 261120   ;;  %v263_v0 = vlaneseq  ;;  %v541_v4 = vmov 0   ;;  %vm304_vm1 = vcmask 130048   ;;  %s641_s0 = inlined_call_operand.vmem [shape: bf16[32,128], index: 0, kind: input, shape index: {}]   ;;  %s642_s2 = inlined_call_operand.vmem [shape: bf16[64,32], index: 2, kind: input, shape index: {}]   ;;  %s643_s1 = inlined_call_operand.vmem [shape: s32[1,128], index: 1, kind: input, shape index: {}]   ;;  %s644_s4 = inlined_call_operand.vmem [shape: bf16[64,16], index: 4, kind: input, shape index: {}]   ;;  %s645_s3 = inlined_call_operand.vmem [shape: f32[64,1], index: 3, kind: input, shape index: {}]   ;;  %s646_s5 = inlined_call_operand.vmem [shape: f32[1,8,128], index: 5, kind: output, shape index: {}]  }
   0x1   :  { %v483_v1 = vld [vmem:[%s641_s0 + $0x8] sm:$0xff]   ;;  %v484_v2 = vld [vmem:[%s641_s0] sm:$0xff]   ;;  %481 = vset.pattern.permute.xlu0 %v541_v4  ;;  %482 = vset.pattern.permute.xlu1 %v541_v4  ;;  %v487_v8 = vld [vmem:[%s642_s2 + $0x10] sm:$0xff]   ;;  %v542_v11 = vmov 1.0|1.0  }
   0x2   :  { %v264_v3 = vshrl.u32 %v263_v0, 7  ;;  %457 = vmatprep.subr.bf16.mxu0 %v483_v1  ;;  %v485_v5 = vld [vmem:[%s642_s2] sm:$0xff]   ;;  %v486_v7 = vld [vmem:[%s642_s2 + $0x8] sm:$0xff]   ;;  %v491_v13 = vld [vmem:[%s644_s4 + $0x10] sm:$0xff]  }
   0x3   :  { %458 = vmatpush3.bf16.msra.mxu0 %v483_v1  ;;  %461 = vmatprep.mubr.msk.bf16.mxu0 %vm113_vm0, %v485_v5  ;;  %v435_v9 = vld [vmem:[%s643_s1] ss:$0 sm:$0xff]  ;;  %v490_v12 = vld [vmem:[%s644_s4 + $0x8] sm:$0xff]   ;;  %v35_v15 = vld [vmem:[%s645_s3 + $0x10] sm:$0xff] }
   0x4   :  { %v265_v6 = vadd.s32 8, %v264_v3  ;;  %459 = vmatprep.subr.bf16.mxu0 %v484_v2  ;;  %vm271_vm2 = vcmp.eq.s32.totalorder %v264_v3, %v435_v9  ;;  %v489_v10 = vld [vmem:[%s644_s4] sm:$0xff]   ;;  %53 = vperm.xlu1 %482, %v35_v15   ;;  %v34_v16 = vld [vmem:[%s645_s3 + $0x8] sm:$0xff]  ;;  %v36_v17 = vld [vmem:[%s645_s3 + $0x18] sm:$0xff] }
   0x5   :  { %471 = vmatprep.mubr.msk.bf16.mxu1 %vm304_vm1, %v489_v10  ;;  %v33_v14 = vld [vmem:[%s645_s3] sm:$0xff]  ;;  %v488_v18 = vld [vmem:[%s642_s2 + $0x18] sm:$0xff]   ;;  %v38_v21 = vld [vmem:[%s645_s3 + $0x28] sm:$0xff] }
   0x6   :  { %vm272_vm3 = vcmp.eq.s32.totalorder %v265_v6, %v435_v9  ;;  %43 = vperm.xlu0 %481, %v33_v14   ;;  %v37_v19 = vld [vmem:[%s645_s3 + $0x20] sm:$0xff]  ;;  %v492_v20 = vld [vmem:[%s644_s4 + $0x18] sm:$0xff]   ;;  %v39_v22 = vld [vmem:[%s645_s3 + $0x30] sm:$0xff] }
   0x7   :  { %460 = vmatpush3.bf16.msra.mxu0 %v484_v2  ;;  %vm440_vm4 = vmpackc.low %vm272_vm3, %vm271_vm2  ;;  %v40_v23 = vld [vmem:[%s645_s3 + $0x38] sm:$0xff] }
   0x8   :  { %469 = vmatprep.subr.msk.bf16.mxu1 %vm440_vm4, %v542_v11  ;;  %58 = vperm.xlu1 %482, %v36_v17  }
   0x9   :  { %470 = vmatpush3.bf16.msk.msra.mxu1 %vm440_vm4, %v542_v11 }
   0xa   :  { %462 = vmatmul.mubr.msk.bf16.vlgmr.msra.gmra.mxu0 %vm113_vm0, %v486_v7  ;;  %48 = vperm.xlu0 %481, %v34_v16  }
   0xb   :  { %465 = vmatprep.mubr.msk.bf16.mxu0 %vm113_vm0, %v487_v8 }
   0xc   :  { %472 = vmatmul.mubr.msk.bf16.vlgmr.msra.gmra.mxu1 %vm304_vm1, %v490_v12  ;;  %68 = vperm.xlu1 %482, %v38_v21  }
   0xd   :  { %475 = vmatprep.mubr.msk.bf16.mxu1 %vm304_vm1, %v491_v13 }
   0xe   :  { %63 = vperm.xlu0 %481, %v37_v19  }
  0x10   :  { %78 = vperm.xlu1 %482, %v40_v23  }
  0x12   :  { %466 = vmatmul.mubr.msk.bf16.gmra.mxu0 %vm113_vm0, %v488_v18  ;;  %73 = vperm.xlu0 %481, %v39_v22  }
  0x14   :  { %476 = vmatmul.mubr.msk.bf16.gmra.mxu1 %vm304_vm1, %v492_v20 }
  0x7f   :  { %v54_v25 = vpop.permute.xlu1 %53 }
  0x81   :  { %v44_v24 = vpop.permute.xlu0 %43 }
  0x83   :  { %v59_v27 = vpop.permute.xlu1 %58 }
  0x85   :  { %v49_v26 = vpop.permute.xlu0 %48 }
  0x87   :  { %v69_v38 = vpop.permute.xlu1 %68 }
  0x89   :  { %v64_v30 = vpop.permute.xlu0 %63 }
  0x8b   :  { %v79_v52 = vpop.permute.xlu1 %78 }
  0x8d   :  { %v74_v43 = vpop.permute.xlu0 %73 }
  0xca   :  { %v463_v28 = vpop.f32.mrf.mxu0 }
  0xcb   :  { %v169_v29 = vadd.f32 %v463_v28, %v54_v25 }
  0xcc   :  { %v160_v31 = vpop.f32.mrf.mxu0  ;;  %v473_v21 = vpop.f32.mrf.mxu1 }
  0xcd   :  { %v193_v32 = vsub.f32 0.0, %v169_v29  ;;  %v161_v33 = vadd.f32 %v160_v31, %v44_v24 }
  0xce   :  { %v464_v34 = vpop.f32.mrf.mxu0 }
  0xcf   :  { %v203_v35 = vmul.f32 1.442695, %v193_v32  ;;  %v191_v36 = vsub.f32 0.0, %v161_v33  ;;  %v172_v37 = vadd.f32 %v464_v34, %v59_v27 }
  0xd0   :  { %v163_v39 = vpop.f32.mrf.mxu0 }
  0xd1   :  { %493 = vpow2.f32 %v203_v35  ;;  %v199_v40 = vmul.f32 1.442695, %v191_v36  ;;  %v194_v41 = vsub.f32 0.0, %v172_v37  ;;  %v164_v42 = vadd.f32 %v163_v39, %v49_v26  ;;  %v351_v26 = vpop.f32.mrf.mxu1 }
  0xd2   :  { %v467_v44 = vpop.f32.mrf.mxu0 }
  0xd3   :  { %495 = vpow2.f32 %v199_v40  ;;  %v205_v45 = vmul.f32 1.442695, %v194_v41  ;;  %v192_v46 = vsub.f32 0.0, %v164_v42  ;;  %v185_v47 = vadd.f32 %v467_v44, %v74_v43  ;;  %v474_v31 = vpop.f32.mrf.mxu1 }
  0xd4   :  { %v176_v48 = vpop.f32.mrf.mxu0 }
  0xd5   :  { %497 = vpow2.f32 %v205_v45  ;;  %v201_v49 = vmul.f32 1.442695, %v192_v46  ;;  %v197_v50 = vsub.f32 0.0, %v185_v47  ;;  %v177_v51 = vadd.f32 %v176_v48, %v64_v30  ;;  %v354_v35 = vpop.f32.mrf.mxu1 }
  0xd6   :  { %v468_v53 = vpop.f32.mrf.mxu0 }
  0xd7   :  { %499 = vpow2.f32 %v201_v49  ;;  %v211_v54 = vmul.f32 1.442695, %v197_v50  ;;  %v195_v55 = vsub.f32 0.0, %v177_v51  ;;  %v188_v56 = vadd.f32 %v468_v53, %v79_v52  ;;  %v477_v39 = vpop.f32.mrf.mxu1 }
  0xd8   :  { %v179_v57 = vpop.f32.mrf.mxu0 }
  0xd9   :  { %501 = vpow2.f32 %v211_v54  ;;  %v207_v58 = vmul.f32 1.442695, %v195_v55  ;;  %v198_v59 = vsub.f32 0.0, %v188_v56  ;;  %v180_v60 = vadd.f32 %v179_v57, %v69_v38  ;;  %v367_v45 = vpop.f32.mrf.mxu1 }
  0xdb   :  { %503 = vpow2.f32 %v207_v58  ;;  %v213_v61 = vmul.f32 1.442695, %v198_v59  ;;  %v196_v62 = vsub.f32 0.0, %v180_v60  ;;  %v478_v52 = vpop.f32.mrf.mxu1 }
  0xdd   :  { %505 = vpow2.f32 %v213_v61  ;;  %v209_v63 = vmul.f32 1.442695, %v196_v62  ;;  %v370_v59 = vpop.f32.mrf.mxu1 }
  0xde   :  { %v494_v0 = vpop.eup %493 }
  0xdf   :  { %v217_v1 = vadd.f32 1.0, %v494_v0  ;;  %507 = vpow2.f32 %v209_v63 }
  0xe0   :  { %v496_v2 = vpop.eup %495 }
  0xe1   :  { %509 = vrcp.f32 %v217_v1  ;;  %v215_v3 = vadd.f32 1.0, %v496_v2 }
  0xe2   :  { %v498_v4 = vpop.eup %497 }
  0xe3   :  { %511 = vrcp.f32 %v215_v3  ;;  %v218_v5 = vadd.f32 1.0, %v498_v4 }
  0xe4   :  { %v500_v6 = vpop.eup %499 }
  0xe5   :  { %513 = vrcp.f32 %v218_v5  ;;  %v216_v7 = vadd.f32 1.0, %v500_v6 }
  0xe6   :  { %v502_v8 = vpop.eup %501 }
  0xe7   :  { %515 = vrcp.f32 %v216_v7  ;;  %v221_v9 = vadd.f32 1.0, %v502_v8 }
  0xe8   :  { %v504_v10 = vpop.eup %503 }
  0xe9   :  { %517 = vrcp.f32 %v221_v9  ;;  %v219_v11 = vadd.f32 1.0, %v504_v10 }
  0xea   :  { %v506_v12 = vpop.eup %505 }
  0xeb   :  { %519 = vrcp.f32 %v219_v11  ;;  %v222_v13 = vadd.f32 1.0, %v506_v12 }
  0xec   :  { %v508_v14 = vpop.eup %507 }
  0xed   :  { %521 = vrcp.f32 %v222_v13  ;;  %v220_v15 = vadd.f32 1.0, %v508_v14 }
  0xee   :  { %v510_v16 = vpop.eup %509 }
  0xef   :  { %523 = vrcp.f32 %v220_v15  ;;  %v241_v17 = vadd.f32 1e-08, %v510_v16 }
  0xf0   :  { %v512_v18 = vpop.eup %511 }
  0xf1   :  { %v239_v19 = vadd.f32 1e-08, %v512_v18  ;;  %525 = vlog2.f32 %v241_v17 }
  0xf2   :  { %v514_v20 = vpop.eup %513 }
  0xf3   :  { %527 = vlog2.f32 %v239_v19  ;;  %v242_v22 = vadd.f32 1e-08, %v514_v20 }
  0xf4   :  { %v516_v23 = vpop.eup %515 }
  0xf5   :  { %v240_v24 = vadd.f32 1e-08, %v516_v23  ;;  %529 = vlog2.f32 %v242_v22 }
  0xf6   :  { %v518_v25 = vpop.eup %517 }
  0xf7   :  { %531 = vlog2.f32 %v240_v24  ;;  %v245_v27 = vadd.f32 1e-08, %v518_v25 }
  0xf8   :  { %v520_v28 = vpop.eup %519 }
  0xf9   :  { %v243_v29 = vadd.f32 1e-08, %v520_v28  ;;  %533 = vlog2.f32 %v245_v27 }
  0xfa   :  { %v522_v30 = vpop.eup %521 }
  0xfb   :  { %535 = vlog2.f32 %v243_v29  ;;  %v246_v32 = vadd.f32 1e-08, %v522_v30 }
  0xfc   :  { %v524_v33 = vpop.eup %523 }
  0xfd   :  { %v244_v34 = vadd.f32 1e-08, %v524_v33  ;;  %537 = vlog2.f32 %v246_v32 }
  0xfe   :  { %v526_v36 = vpop.eup %525 }
  0xff   :  { %539 = vlog2.f32 %v244_v34  ;;  %v252_v41 = vmul.f32 0.6931472, %v526_v36 }
 0x100   :  { %v528_v37 = vpop.eup %527 }
 0x101   :  { %v248_v38 = vmul.f32 0.6931472, %v528_v37  ;;  %v384_v47 = vmul.f32 %v473_v21, %v252_v41 }
 0x102   :  { %v530_v40 = vpop.eup %529 }
 0x103   :  { %v382_v42 = vmul.f32 %v351_v26, %v248_v38  ;;  %v254_v48 = vmul.f32 0.6931472, %v530_v40 }
 0x104   :  { %v532_v43 = vpop.eup %531 }
 0x105   :  { %v250_v44 = vmul.f32 0.6931472, %v532_v43  ;;  %390 = vadd.xlane.f32.xlu0 %v382_v42  ;;  %v385_v54 = vmul.f32 %v474_v31, %v254_v48 }
 0x106   :  { %v534_v46 = vpop.eup %533 }
 0x107   :  { %v383_v49 = vmul.f32 %v354_v35, %v250_v44  ;;  %v260_v55 = vmul.f32 0.6931472, %v534_v46 }
 0x108   :  { %v536_v50 = vpop.eup %535 }
 0x109   :  { %v256_v51 = vmul.f32 0.6931472, %v536_v50  ;;  %392 = vadd.xlane.f32.xlu1 %v383_v49  ;;  %394 = vadd.xlane.f32.xlu0 %v384_v47  ;;  %v388_v60 = vmul.f32 %v477_v39, %v260_v55 }
 0x10a   :  { %v538_v53 = vpop.eup %537 }
 0x10b   :  { %v386_v56 = vmul.f32 %v367_v45, %v256_v51  ;;  %v262_v61 = vmul.f32 0.6931472, %v538_v53 }
 0x10c   :  { %v540_v57 = vpop.eup %539 }
 0x10d   :  { %v258_v58 = vmul.f32 0.6931472, %v540_v57  ;;  %398 = vadd.xlane.f32.xlu1 %v386_v56  ;;  %396 = vadd.xlane.f32.xlu0 %v385_v54  ;;  %v389_v63 = vmul.f32 %v478_v52, %v262_v61 }
 0x10f   :  { %v387_v62 = vmul.f32 %v370_v59, %v258_v58 }
 0x111   :  { %402 = vadd.xlane.f32.xlu1 %v388_v60  ;;  %400 = vadd.xlane.f32.xlu0 %v387_v62 }
 0x115   :  { %404 = vadd.xlane.f32.xlu0 %v389_v63 }
 0x18e   :  { %v391_v0 = vpop.xlane.xlu0 %390 }
 0x192   :  { %v393_v1 = vpop.xlane.xlu1 %392  ;;  %v395_v2 = vpop.xlane.xlu0 %394 }
 0x193   :  { %v406_v3 = vadd.f32 %v393_v1, %v391_v0 }
 0x195   :  { %v407_v4 = vadd.f32 %v406_v3, %v395_v2 }
 0x196   :  { %v399_v5 = vpop.xlane.xlu1 %398  ;;  %v397_v6 = vpop.xlane.xlu0 %396 }
 0x197   :  { %v408_v7 = vadd.f32 %v407_v4, %v397_v6 }
 0x199   :  { %v409_v8 = vadd.f32 %v408_v7, %v399_v5 }
 0x19a   :  { %v401_v9 = vpop.xlane.xlu0 %400  ;;  %v403_v11 = vpop.xlane.xlu1 %402 }
 0x19b   :  { %v410_v10 = vadd.f32 %v409_v8, %v401_v9 }
 0x19d   :  { %v411_v12 = vadd.f32 %v410_v10, %v403_v11 }
 0x19e   :  { %v405_v13 = vpop.xlane.xlu0 %404 }
 0x19f   :  { %v412_v14 = vadd.f32 %v411_v12, %v405_v13 }
 0x1a1   :  { %v413_v15 = vrot.slane %v412_v14, 4 }
 0x1a3   :  { %v414_v16 = vadd.f32 %v413_v15, %v412_v14 }
 0x1a5   :  { %v415_v17 = vrot.slane %v414_v16, 2 }
 0x1a7   :  { %v416_v18 = vadd.f32 %v415_v17, %v414_v16 }
 0x1a9   :  { %v417_v19 = vrot.slane %v416_v18, 1 }
 0x1ab   :  { %v418_v20 = vadd.f32 %v417_v19, %v416_v18 }
 0x1ad   :  { %420 = vst [vmem:[%s646_s5] sm:$0xff] %v418_v20 }

</bundles_post_ra>
